<compile_context>
chip_gen: v7x
topology: tpu7x:2x2x1
jax: 0.10.0
libtpu: 0.0.40
codegen_flags: <defaults>
</compile_context>

<pallas_src>
import math

import jax
import jax.numpy as jnp
from jax.experimental import pallas as pl
from jax.experimental.pallas import tpu as pltpu


def lstm_seq_kernel(x_ref, m_ref, w_ih_ref, w_hh_ref, b_ref, w_out_ref, b_out_ref,
                    out_ref):
    """Entire LSTM recurrence + output Linear in one invocation.

    x_ref:     (T, B, 1)  time-major inputs (batch padded to sublane multiple)
    m_ref:     (T, B, 1)  validity mask (1.0 if t < len[b] else 0.0)
    w_ih_ref:  (1, 4H)    input->gate weights (input_size == 1), transposed vs PyTorch
    w_hh_ref:  (H, 4H)    hidden->gate weights, transposed vs PyTorch
    b_ref:     (1, 4H)    b_ih + b_hh
    w_out_ref: (1, H)     output Linear weight (PyTorch layout)
    b_out_ref: (1, 1)     output Linear bias
    out_ref:   (T, B)     y[t, b]
    """
    T, B, _ = x_ref.shape
    H = w_hh_ref.shape[0]

    x_all = x_ref[...]                  # (T, B, 1)
    m_all = m_ref[...]                  # (T, B, 1)

    # sigmoid(z) == 0.5*(tanh(z/2) + 1). Pre-scale the i/f/o gate columns by 1/2
    # ONCE here (prologue) so the serial loop needs a single tanh pass per step.
    lane = jax.lax.broadcasted_iota(jnp.int32, (1, 4 * H), 1)
    is_g_gate = (lane >= 2 * H) & (lane < 3 * H)
    scale = jnp.where(is_g_gate, jnp.float32(1.0), jnp.float32(0.5))   # (1, 4H)

    w_hh_s = w_hh_ref[...] * scale                                     # (H, 4H)
    w_ih_s = w_ih_ref[...] * scale                                     # (1, 4H)
    b_s = b_ref[...] * scale                                           # (1, 4H)

    # Hoisted out of the serial recurrence: (x_t @ W_ih^T + b) * scale for all t.
    xg_all = x_all * w_ih_s[None] + b_s[None]                          # (T, B, 4H)

    h = jnp.zeros((B, H), jnp.float32)
    c = jnp.zeros((B, H), jnp.float32)
    hs = []
    for t in range(T):                  # fully unrolled; T is small and static
        g_pre = xg_all[t] + jnp.dot(h, w_hh_s,
                                    preferred_element_type=jnp.float32)   # (B, 4H)
        t_all = jnp.tanh(g_pre)         # single EUP pass over the full (B, 4H) vreg
        # PyTorch gate order i, f, g, o.
        i_g = 0.5 * (t_all[:, 0 * H:1 * H] + 1.0)
        f_g = 0.5 * (t_all[:, 1 * H:2 * H] + 1.0)
        g_g = t_all[:, 2 * H:3 * H]
        o_g = 0.5 * (t_all[:, 3 * H:4 * H] + 1.0)

        c_new = f_g * c + i_g * g_g
        h_new = o_g * jnp.tanh(c_new)

        m_t = m_all[t]                  # (B, 1)
        # Freeze state past each sequence's length (packed-sequence semantics).
        h = h + m_t * (h_new - h)
        c = c + m_t * (c_new - c)
        hs.append(h_new * m_t)          # padded steps -> 0, Linear then gives bias only

    hs_all = jnp.stack(hs, axis=0)                                  # (T, B, H)
    # Single batched output projection (hoisted out of the serial loop).
    w_out_row = w_out_ref[...][None]                                # (1, 1, H)
    y = jnp.sum(hs_all * w_out_row, axis=-1) + b_out_ref[...]       # (T, B)
    out_ref[...] = y


def rnn_forward(x_padded, x_lens, params):
    """x_padded: (B, T, 1) float32 batch-first (as in the PyTorch module).
    x_lens: host-side lengths (list/ints), as PyTorch requires.
    Returns (B, max(x_lens), 1) float32."""
    B, T, _ = x_padded.shape
    H = params["w_hh"].shape[0]
    Bp = ((B + 7) // 8) * 8             # pad batch to sublane multiple

    lens = jnp.asarray(x_lens, dtype=jnp.int32)
    lens_p = jnp.pad(lens, (0, Bp - B))
    mask_tb = (jnp.arange(T, dtype=jnp.int32)[:, None]
               < lens_p[None, :]).astype(jnp.float32)               # (T, Bp)

    x_tb = jnp.transpose(x_padded, (1, 0, 2)).astype(jnp.float32)   # (T, B, 1)
    x_tb = jnp.pad(x_tb, ((0, 0), (0, Bp - B), (0, 0)))             # (T, Bp, 1)
    m_tb = mask_tb[:, :, None]                                      # (T, Bp, 1)

    def full(shape):
        return pl.BlockSpec(shape, lambda i: (0,) * len(shape))

    out_tb = pl.pallas_call(
        lstm_seq_kernel,
        out_shape=jax.ShapeDtypeStruct((T, Bp), jnp.float32),
        grid=(1,),
        in_specs=[
            full((T, Bp, 1)),           # x
            full((T, Bp, 1)),           # mask
            full((1, 4 * H)),           # w_ih
            full((H, 4 * H)),           # w_hh
            full((1, 4 * H)),           # b
            full((1, H)),               # w_out
            full((1, 1)),               # b_out
        ],
        out_specs=full((T, Bp)),
        compiler_params=pltpu.CompilerParams(
            dimension_semantics=("arbitrary",),
        ),
    )(x_tb, m_tb, params["w_ih"], params["w_hh"], params["b"],
      params["w_out"], params["b_out"])

    out = jnp.transpose(out_tb)[:B]              # (B, T)
    t_max = int(max(int(l) for l in x_lens))     # pad_packed_sequence max length
    return out[:, :t_max, None]                  # (B, t_max, 1)


def init_params(key, hidden_dim):
    """Deterministic init mirroring nn.LSTM(1, H) + nn.Linear(H, 1) parameter shapes."""
    H = hidden_dim
    k = 1.0 / math.sqrt(H)
    keys = jax.random.split(key, 6)
    # PyTorch shapes: weight_ih (4H,1), weight_hh (4H,H), bias_ih (4H,), bias_hh (4H,)
    w_ih_pt = jax.random.uniform(keys[0], (4 * H, 1), jnp.float32, -k, k)
    w_hh_pt = jax.random.uniform(keys[1], (4 * H, H), jnp.float32, -k, k)
    b_ih = jax.random.uniform(keys[2], (4 * H,), jnp.float32, -k, k)
    b_hh = jax.random.uniform(keys[3], (4 * H,), jnp.float32, -k, k)
    # Linear: weight (1, H), bias (1,)
    w_lin = jax.random.uniform(keys[4], (1, H), jnp.float32, -k, k)
    b_lin = jax.random.uniform(keys[5], (1,), jnp.float32, -k, k)
    return {
        "w_ih": jnp.transpose(w_ih_pt),            # (1, 4H)
        "w_hh": jnp.transpose(w_hh_pt),            # (H, 4H)
        "b": (b_ih + b_hh).reshape(1, 4 * H),      # (1, 4H)
        "w_out": w_lin,                            # (1, H)
        "b_out": b_lin.reshape(1, 1),              # (1, 1)
    }


def rnn_reference(x_padded, x_lens, params):
    """Pure-JAX reference mirroring packed-LSTM + Linear semantics (standard sigmoid/tanh)."""
    B, T, _ = x_padded.shape
    H = params["w_hh"].shape[0]
    w_ih, w_hh, b = params["w_ih"], params["w_hh"], params["b"]
    w_out, b_out = params["w_out"], params["b_out"]
    lens = jnp.asarray(x_lens, jnp.int32)
    h = jnp.zeros((B, H), jnp.float32)
    c = jnp.zeros((B, H), jnp.float32)
    ys = []
    for t in range(T):
        x_t = x_padded[:, t, :]                                     # (B, 1)
        gates = x_t * w_ih + h @ w_hh + b
        i_g = jax.nn.sigmoid(gates[:, :H])
        f_g = jax.nn.sigmoid(gates[:, H:2 * H])
        g_g = jnp.tanh(gates[:, 2 * H:3 * H])
        o_g = jax.nn.sigmoid(gates[:, 3 * H:])
        c_new = f_g * c + i_g * g_g
        h_new = o_g * jnp.tanh(c_new)
        m = (t < lens).astype(jnp.float32)[:, None]
        h = m * h_new + (1.0 - m) * h
        c = m * c_new + (1.0 - m) * c
        ys.append((h_new * m) @ w_out.T + b_out)                    # (B, 1)
    y = jnp.stack(ys, axis=1)                                       # (B, T, 1)
    t_max = int(max(int(l) for l in x_lens))
    return y[:, :t_max, :]


if __name__ == "__main__":
    B, T, H = 4, 8, 32
    key = jax.random.PRNGKey(0)
    k_param, k_x = jax.random.split(key)

    params = init_params(k_param, H)

    x_lens = [8, 5, 3, 6]                            # per-sequence valid lengths
    x_padded = jax.random.normal(k_x, (B, T, 1), dtype=jnp.float32)
    # zero out pad positions (as pad_sequence would produce)
    pad_mask = (jnp.arange(T)[None, :, None] <
                jnp.asarray(x_lens, jnp.int32)[:, None, None]).astype(jnp.float32)
    x_padded = x_padded * pad_mask

    out = rnn_forward(x_padded, x_lens, params)
    jax.block_until_ready(out)
    assert out.shape == (B, max(x_lens), 1), out.shape

    ref = rnn_reference(x_padded, x_lens, params)
    assert jnp.allclose(out, ref, atol=2e-5, rtol=2e-5), float(jnp.abs(out - ref).max())

    print("KERNEL_OK")
</pallas_src>

<mosaic_0001>
module attributes {stable_mosaic.version = 11 : i64} {
  func.func @lstm_seq_kernel(%arg0: i32, %arg1: memref<8x8x1xf32, #tpu.memory_space<vmem>>, %arg2: memref<8x8x1xf32, #tpu.memory_space<vmem>>, %arg3: memref<1x128xf32, #tpu.memory_space<vmem>>, %arg4: memref<32x128xf32, #tpu.memory_space<vmem>>, %arg5: memref<1x128xf32, #tpu.memory_space<vmem>>, %arg6: memref<1x32xf32, #tpu.memory_space<vmem>>, %arg7: memref<1x1xf32, #tpu.memory_space<vmem>>, %arg8: memref<8x8xf32, #tpu.memory_space<vmem>>) attributes {dimension_semantics = [#tpu.dimension_semantics<arbitrary>], iteration_bounds = array<i64: 1>, scalar_prefetch = 0 : i64, scratch_operands = 0 : i64, tpu.core_type = #tpu.core_type<tc>, window_params = [{pipeline_mode = #tpu.pipeline_mode<synchronous>, transform_indices = @transform_0, window_bounds = array<i64: 8, 8, 1>}, {pipeline_mode = #tpu.pipeline_mode<synchronous>, transform_indices = @transform_1, window_bounds = array<i64: 8, 8, 1>}, {pipeline_mode = #tpu.pipeline_mode<synchronous>, transform_indices = @transform_2, window_bounds = array<i64: 1, 128>}, {pipeline_mode = #tpu.pipeline_mode<synchronous>, transform_indices = @transform_3, window_bounds = array<i64: 32, 128>}, {pipeline_mode = #tpu.pipeline_mode<synchronous>, transform_indices = @transform_4, window_bounds = array<i64: 1, 128>}, {pipeline_mode = #tpu.pipeline_mode<synchronous>, transform_indices = @transform_5, window_bounds = array<i64: 1, 32>}, {pipeline_mode = #tpu.pipeline_mode<synchronous>, transform_indices = @transform_6, window_bounds = array<i64: 1, 1>}, {pipeline_mode = #tpu.pipeline_mode<synchronous>, transform_indices = @transform_7, window_bounds = array<i64: 8, 8>}]} {
    %c0 = arith.constant 0 : index
    %c0_0 = arith.constant 0 : index
    %c0_1 = arith.constant 0 : index
    %0 = vector.load %arg1[%c0, %c0_0, %c0_1] : memref<8x8x1xf32, #tpu.memory_space<vmem>>, vector<8x8x1xf32>
    %c0_2 = arith.constant 0 : index
    %c0_3 = arith.constant 0 : index
    %c0_4 = arith.constant 0 : index
    %1 = vector.load %arg2[%c0_2, %c0_3, %c0_4] : memref<8x8x1xf32, #tpu.memory_space<vmem>>, vector<8x8x1xf32>
    %2 = tpu.iota {dimensions = array<i32: 1>} : vector<1x128xi32>
    %c64_i32 = arith.constant 64 : i32
    %3 = vector.broadcast %c64_i32 : i32 to vector<1x128xi32>
    %4 = arith.cmpi sge, %2, %3 : vector<1x128xi32>
    %c96_i32 = arith.constant 96 : i32
    %5 = vector.broadcast %c96_i32 : i32 to vector<1x128xi32>
    %6 = arith.cmpi slt, %2, %5 : vector<1x128xi32>
    %7 = arith.andi %4, %6 : vector<1x128xi1>
    %cst = arith.constant 1.000000e+00 : f32
    %cst_5 = arith.constant 5.000000e-01 : f32
    %8 = vector.broadcast %cst : f32 to vector<1x128xf32>
    %9 = vector.broadcast %cst_5 : f32 to vector<1x128xf32>
    %10 = arith.select %7, %8, %9 : vector<1x128xi1>, vector<1x128xf32>
    %c0_6 = arith.constant 0 : index
    %c0_7 = arith.constant 0 : index
    %11 = vector.load %arg4[%c0_6, %c0_7] : memref<32x128xf32, #tpu.memory_space<vmem>>, vector<32x128xf32>
    %12 = vector.broadcast %10 : vector<1x128xf32> to vector<32x128xf32>
    %13 = arith.mulf %11, %12 : vector<32x128xf32>
    %c0_8 = arith.constant 0 : index
    %c0_9 = arith.constant 0 : index
    %14 = vector.load %arg3[%c0_8, %c0_9] : memref<1x128xf32, #tpu.memory_space<vmem>>, vector<1x128xf32>
    %15 = arith.mulf %14, %10 : vector<1x128xf32>
    %c0_10 = arith.constant 0 : index
    %c0_11 = arith.constant 0 : index
    %16 = vector.load %arg5[%c0_10, %c0_11] : memref<1x128xf32, #tpu.memory_space<vmem>>, vector<1x128xf32>
    %17 = arith.mulf %16, %10 : vector<1x128xf32>
    %18 = vector.shape_cast %15 : vector<1x128xf32> to vector<1x1x128xf32>
    %19 = vector.broadcast %0 : vector<8x8x1xf32> to vector<8x8x128xf32>
    %20 = vector.broadcast %18 : vector<1x1x128xf32> to vector<8x8x128xf32>
    %21 = arith.mulf %19, %20 : vector<8x8x128xf32>
    %22 = vector.shape_cast %17 : vector<1x128xf32> to vector<1x1x128xf32>
    %23 = vector.broadcast %22 : vector<1x1x128xf32> to vector<8x8x128xf32>
    %24 = arith.addf %21, %23 : vector<8x8x128xf32>
    %cst_12 = arith.constant 0.000000e+00 : f32
    %25 = vector.broadcast %cst_12 : f32 to vector<8x32xf32>
    %cst_13 = arith.constant 0.000000e+00 : f32
    %26 = vector.broadcast %cst_13 : f32 to vector<8x32xf32>
    %27 = vector.extract_strided_slice %24 {offsets = [0, 0, 0], sizes = [1, 8, 128], strides = [1, 1, 1]} : vector<8x8x128xf32> to vector<1x8x128xf32>
    %28 = vector.shape_cast %27 : vector<1x8x128xf32> to vector<8x128xf32>
    %cst_14 = arith.constant dense<0.000000e+00> : vector<8x128xf32>
    %29 = tpu.matmul %25, %13, %cst_14 {dimension_numbers = #tpu.dot_dimension_numbers<[1], [0], [0], [1], [0, 0, 1, 1], [], []>} : vector<8x32xf32>, vector<32x128xf32>, vector<8x128xf32> -> vector<8x128xf32>
    %30 = arith.addf %28, %29 : vector<8x128xf32>
    %31 = math.tanh %30 : vector<8x128xf32>
    %32 = vector.extract_strided_slice %31 {offsets = [0, 0], sizes = [8, 32], strides = [1, 1]} : vector<8x128xf32> to vector<8x32xf32>
    %cst_15 = arith.constant 1.000000e+00 : f32
    %33 = vector.broadcast %cst_15 : f32 to vector<8x32xf32>
    %34 = arith.addf %32, %33 : vector<8x32xf32>
    %cst_16 = arith.constant 5.000000e-01 : f32
    %35 = vector.broadcast %cst_16 : f32 to vector<8x32xf32>
    %36 = arith.mulf %35, %34 : vector<8x32xf32>
    %37 = vector.extract_strided_slice %31 {offsets = [0, 32], sizes = [8, 32], strides = [1, 1]} : vector<8x128xf32> to vector<8x32xf32>
    %cst_17 = arith.constant 1.000000e+00 : f32
    %38 = vector.broadcast %cst_17 : f32 to vector<8x32xf32>
    %39 = arith.addf %37, %38 : vector<8x32xf32>
    %cst_18 = arith.constant 5.000000e-01 : f32
    %40 = vector.broadcast %cst_18 : f32 to vector<8x32xf32>
    %41 = arith.mulf %40, %39 : vector<8x32xf32>
    %42 = vector.extract_strided_slice %31 {offsets = [0, 64], sizes = [8, 32], strides = [1, 1]} : vector<8x128xf32> to vector<8x32xf32>
    %43 = vector.extract_strided_slice %31 {offsets = [0, 96], sizes = [8, 32], strides = [1, 1]} : vector<8x128xf32> to vector<8x32xf32>
    %cst_19 = arith.constant 1.000000e+00 : f32
    %44 = vector.broadcast %cst_19 : f32 to vector<8x32xf32>
    %45 = arith.addf %43, %44 : vector<8x32xf32>
    %cst_20 = arith.constant 5.000000e-01 : f32
    %46 = vector.broadcast %cst_20 : f32 to vector<8x32xf32>
    %47 = arith.mulf %46, %45 : vector<8x32xf32>
    %48 = arith.mulf %41, %26 : vector<8x32xf32>
    %49 = arith.mulf %36, %42 : vector<8x32xf32>
    %50 = arith.addf %48, %49 : vector<8x32xf32>
    %51 = math.tanh %50 : vector<8x32xf32>
    %52 = arith.mulf %47, %51 : vector<8x32xf32>
    %53 = vector.extract_strided_slice %1 {offsets = [0, 0, 0], sizes = [1, 8, 1], strides = [1, 1, 1]} : vector<8x8x1xf32> to vector<1x8x1xf32>
    %54 = vector.shape_cast %53 : vector<1x8x1xf32> to vector<8x1xf32>
    %55 = arith.subf %52, %25 : vector<8x32xf32>
    %56 = vector.broadcast %54 : vector<8x1xf32> to vector<8x32xf32>
    %57 = arith.mulf %56, %55 : vector<8x32xf32>
    %58 = arith.addf %25, %57 : vector<8x32xf32>
    %59 = arith.subf %50, %26 : vector<8x32xf32>
    %60 = vector.broadcast %54 : vector<8x1xf32> to vector<8x32xf32>
    %61 = arith.mulf %60, %59 : vector<8x32xf32>
    %62 = arith.addf %26, %61 : vector<8x32xf32>
    %63 = vector.broadcast %54 : vector<8x1xf32> to vector<8x32xf32>
    %64 = arith.mulf %52, %63 : vector<8x32xf32>
    %65 = vector.extract_strided_slice %24 {offsets = [1, 0, 0], sizes = [1, 8, 128], strides = [1, 1, 1]} : vector<8x8x128xf32> to vector<1x8x128xf32>
    %66 = vector.shape_cast %65 : vector<1x8x128xf32> to vector<8x128xf32>
    %cst_21 = arith.constant dense<0.000000e+00> : vector<8x128xf32>
    %67 = tpu.matmul %58, %13, %cst_21 {dimension_numbers = #tpu.dot_dimension_numbers<[1], [0], [0], [1], [0, 0, 1, 1], [], []>} : vector<8x32xf32>, vector<32x128xf32>, vector<8x128xf32> -> vector<8x128xf32>
    %68 = arith.addf %66, %67 : vector<8x128xf32>
    %69 = math.tanh %68 : vector<8x128xf32>
    %70 = vector.extract_strided_slice %69 {offsets = [0, 0], sizes = [8, 32], strides = [1, 1]} : vector<8x128xf32> to vector<8x32xf32>
    %cst_22 = arith.constant 1.000000e+00 : f32
    %71 = vector.broadcast %cst_22 : f32 to vector<8x32xf32>
    %72 = arith.addf %70, %71 : vector<8x32xf32>
    %cst_23 = arith.constant 5.000000e-01 : f32
    %73 = vector.broadcast %cst_23 : f32 to vector<8x32xf32>
    %74 = arith.mulf %73, %72 : vector<8x32xf32>
    %75 = vector.extract_strided_slice %69 {offsets = [0, 32], sizes = [8, 32], strides = [1, 1]} : vector<8x128xf32> to vector<8x32xf32>
    %cst_24 = arith.constant 1.000000e+00 : f32
    %76 = vector.broadcast %cst_24 : f32 to vector<8x32xf32>
    %77 = arith.addf %75, %76 : vector<8x32xf32>
    %cst_25 = arith.constant 5.000000e-01 : f32
    %78 = vector.broadcast %cst_25 : f32 to vector<8x32xf32>
    %79 = arith.mulf %78, %77 : vector<8x32xf32>
    %80 = vector.extract_strided_slice %69 {offsets = [0, 64], sizes = [8, 32], strides = [1, 1]} : vector<8x128xf32> to vector<8x32xf32>
    %81 = vector.extract_strided_slice %69 {offsets = [0, 96], sizes = [8, 32], strides = [1, 1]} : vector<8x128xf32> to vector<8x32xf32>
    %cst_26 = arith.constant 1.000000e+00 : f32
    %82 = vector.broadcast %cst_26 : f32 to vector<8x32xf32>
    %83 = arith.addf %81, %82 : vector<8x32xf32>
    %cst_27 = arith.constant 5.000000e-01 : f32
    %84 = vector.broadcast %cst_27 : f32 to vector<8x32xf32>
    %85 = arith.mulf %84, %83 : vector<8x32xf32>
    %86 = arith.mulf %79, %62 : vector<8x32xf32>
    %87 = arith.mulf %74, %80 : vector<8x32xf32>
    %88 = arith.addf %86, %87 : vector<8x32xf32>
    %89 = math.tanh %88 : vector<8x32xf32>
    %90 = arith.mulf %85, %89 : vector<8x32xf32>
    %91 = vector.extract_strided_slice %1 {offsets = [1, 0, 0], sizes = [1, 8, 1], strides = [1, 1, 1]} : vector<8x8x1xf32> to vector<1x8x1xf32>
    %92 = vector.shape_cast %91 : vector<1x8x1xf32> to vector<8x1xf32>
    %93 = arith.subf %90, %58 : vector<8x32xf32>
    %94 = vector.broadcast %92 : vector<8x1xf32> to vector<8x32xf32>
    %95 = arith.mulf %94, %93 : vector<8x32xf32>
    %96 = arith.addf %58, %95 : vector<8x32xf32>
    %97 = arith.subf %88, %62 : vector<8x32xf32>
    %98 = vector.broadcast %92 : vector<8x1xf32> to vector<8x32xf32>
    %99 = arith.mulf %98, %97 : vector<8x32xf32>
    %100 = arith.addf %62, %99 : vector<8x32xf32>
    %101 = vector.broadcast %92 : vector<8x1xf32> to vector<8x32xf32>
    %102 = arith.mulf %90, %101 : vector<8x32xf32>
    %103 = vector.extract_strided_slice %24 {offsets = [2, 0, 0], sizes = [1, 8, 128], strides = [1, 1, 1]} : vector<8x8x128xf32> to vector<1x8x128xf32>
    %104 = vector.shape_cast %103 : vector<1x8x128xf32> to vector<8x128xf32>
    %cst_28 = arith.constant dense<0.000000e+00> : vector<8x128xf32>
    %105 = tpu.matmul %96, %13, %cst_28 {dimension_numbers = #tpu.dot_dimension_numbers<[1], [0], [0], [1], [0, 0, 1, 1], [], []>} : vector<8x32xf32>, vector<32x128xf32>, vector<8x128xf32> -> vector<8x128xf32>
    %106 = arith.addf %104, %105 : vector<8x128xf32>
    %107 = math.tanh %106 : vector<8x128xf32>
    %108 = vector.extract_strided_slice %107 {offsets = [0, 0], sizes = [8, 32], strides = [1, 1]} : vector<8x128xf32> to vector<8x32xf32>
    %cst_29 = arith.constant 1.000000e+00 : f32
    %109 = vector.broadcast %cst_29 : f32 to vector<8x32xf32>
    %110 = arith.addf %108, %109 : vector<8x32xf32>
    %cst_30 = arith.constant 5.000000e-01 : f32
    %111 = vector.broadcast %cst_30 : f32 to vector<8x32xf32>
    %112 = arith.mulf %111, %110 : vector<8x32xf32>
    %113 = vector.extract_strided_slice %107 {offsets = [0, 32], sizes = [8, 32], strides = [1, 1]} : vector<8x128xf32> to vector<8x32xf32>
    %cst_31 = arith.constant 1.000000e+00 : f32
    %114 = vector.broadcast %cst_31 : f32 to vector<8x32xf32>
    %115 = arith.addf %113, %114 : vector<8x32xf32>
    %cst_32 = arith.constant 5.000000e-01 : f32
    %116 = vector.broadcast %cst_32 : f32 to vector<8x32xf32>
    %117 = arith.mulf %116, %115 : vector<8x32xf32>
    %118 = vector.extract_strided_slice %107 {offsets = [0, 64], sizes = [8, 32], strides = [1, 1]} : vector<8x128xf32> to vector<8x32xf32>
    %119 = vector.extract_strided_slice %107 {offsets = [0, 96], sizes = [8, 32], strides = [1, 1]} : vector<8x128xf32> to vector<8x32xf32>
    %cst_33 = arith.constant 1.000000e+00 : f32
    %120 = vector.broadcast %cst_33 : f32 to vector<8x32xf32>
    %121 = arith.addf %119, %120 : vector<8x32xf32>
    %cst_34 = arith.constant 5.000000e-01 : f32
    %122 = vector.broadcast %cst_34 : f32 to vector<8x32xf32>
    %123 = arith.mulf %122, %121 : vector<8x32xf32>
    %124 = arith.mulf %117, %100 : vector<8x32xf32>
    %125 = arith.mulf %112, %118 : vector<8x32xf32>
    %126 = arith.addf %124, %125 : vector<8x32xf32>
    %127 = math.tanh %126 : vector<8x32xf32>
    %128 = arith.mulf %123, %127 : vector<8x32xf32>
    %129 = vector.extract_strided_slice %1 {offsets = [2, 0, 0], sizes = [1, 8, 1], strides = [1, 1, 1]} : vector<8x8x1xf32> to vector<1x8x1xf32>
    %130 = vector.shape_cast %129 : vector<1x8x1xf32> to vector<8x1xf32>
    %131 = arith.subf %128, %96 : vector<8x32xf32>
    %132 = vector.broadcast %130 : vector<8x1xf32> to vector<8x32xf32>
    %133 = arith.mulf %132, %131 : vector<8x32xf32>
    %134 = arith.addf %96, %133 : vector<8x32xf32>
    %135 = arith.subf %126, %100 : vector<8x32xf32>
    %136 = vector.broadcast %130 : vector<8x1xf32> to vector<8x32xf32>
    %137 = arith.mulf %136, %135 : vector<8x32xf32>
    %138 = arith.addf %100, %137 : vector<8x32xf32>
    %139 = vector.broadcast %130 : vector<8x1xf32> to vector<8x32xf32>
    %140 = arith.mulf %128, %139 : vector<8x32xf32>
    %141 = vector.extract_strided_slice %24 {offsets = [3, 0, 0], sizes = [1, 8, 128], strides = [1, 1, 1]} : vector<8x8x128xf32> to vector<1x8x128xf32>
    %142 = vector.shape_cast %141 : vector<1x8x128xf32> to vector<8x128xf32>
    %cst_35 = arith.constant dense<0.000000e+00> : vector<8x128xf32>
    %143 = tpu.matmul %134, %13, %cst_35 {dimension_numbers = #tpu.dot_dimension_numbers<[1], [0], [0], [1], [0, 0, 1, 1], [], []>} : vector<8x32xf32>, vector<32x128xf32>, vector<8x128xf32> -> vector<8x128xf32>
    %144 = arith.addf %142, %143 : vector<8x128xf32>
    %145 = math.tanh %144 : vector<8x128xf32>
    %146 = vector.extract_strided_slice %145 {offsets = [0, 0], sizes = [8, 32], strides = [1, 1]} : vector<8x128xf32> to vector<8x32xf32>
    %cst_36 = arith.constant 1.000000e+00 : f32
    %147 = vector.broadcast %cst_36 : f32 to vector<8x32xf32>
    %148 = arith.addf %146, %147 : vector<8x32xf32>
    %cst_37 = arith.constant 5.000000e-01 : f32
    %149 = vector.broadcast %cst_37 : f32 to vector<8x32xf32>
    %150 = arith.mulf %149, %148 : vector<8x32xf32>
    %151 = vector.extract_strided_slice %145 {offsets = [0, 32], sizes = [8, 32], strides = [1, 1]} : vector<8x128xf32> to vector<8x32xf32>
    %cst_38 = arith.constant 1.000000e+00 : f32
    %152 = vector.broadcast %cst_38 : f32 to vector<8x32xf32>
    %153 = arith.addf %151, %152 : vector<8x32xf32>
    %cst_39 = arith.constant 5.000000e-01 : f32
    %154 = vector.broadcast %cst_39 : f32 to vector<8x32xf32>
    %155 = arith.mulf %154, %153 : vector<8x32xf32>
    %156 = vector.extract_strided_slice %145 {offsets = [0, 64], sizes = [8, 32], strides = [1, 1]} : vector<8x128xf32> to vector<8x32xf32>
    %157 = vector.extract_strided_slice %145 {offsets = [0, 96], sizes = [8, 32], strides = [1, 1]} : vector<8x128xf32> to vector<8x32xf32>
    %cst_40 = arith.constant 1.000000e+00 : f32
    %158 = vector.broadcast %cst_40 : f32 to vector<8x32xf32>
    %159 = arith.addf %157, %158 : vector<8x32xf32>
    %cst_41 = arith.constant 5.000000e-01 : f32
    %160 = vector.broadcast %cst_41 : f32 to vector<8x32xf32>
    %161 = arith.mulf %160, %159 : vector<8x32xf32>
    %162 = arith.mulf %155, %138 : vector<8x32xf32>
    %163 = arith.mulf %150, %156 : vector<8x32xf32>
    %164 = arith.addf %162, %163 : vector<8x32xf32>
    %165 = math.tanh %164 : vector<8x32xf32>
    %166 = arith.mulf %161, %165 : vector<8x32xf32>
    %167 = vector.extract_strided_slice %1 {offsets = [3, 0, 0], sizes = [1, 8, 1], strides = [1, 1, 1]} : vector<8x8x1xf32> to vector<1x8x1xf32>
    %168 = vector.shape_cast %167 : vector<1x8x1xf32> to vector<8x1xf32>
    %169 = arith.subf %166, %134 : vector<8x32xf32>
    %170 = vector.broadcast %168 : vector<8x1xf32> to vector<8x32xf32>
    %171 = arith.mulf %170, %169 : vector<8x32xf32>
    %172 = arith.addf %134, %171 : vector<8x32xf32>
    %173 = arith.subf %164, %138 : vector<8x32xf32>
    %174 = vector.broadcast %168 : vector<8x1xf32> to vector<8x32xf32>
    %175 = arith.mulf %174, %173 : vector<8x32xf32>
    %176 = arith.addf %138, %175 : vector<8x32xf32>
    %177 = vector.broadcast %168 : vector<8x1xf32> to vector<8x32xf32>
    %178 = arith.mulf %166, %177 : vector<8x32xf32>
    %179 = vector.extract_strided_slice %24 {offsets = [4, 0, 0], sizes = [1, 8, 128], strides = [1, 1, 1]} : vector<8x8x128xf32> to vector<1x8x128xf32>
    %180 = vector.shape_cast %179 : vector<1x8x128xf32> to vector<8x128xf32>
    %cst_42 = arith.constant dense<0.000000e+00> : vector<8x128xf32>
    %181 = tpu.matmul %172, %13, %cst_42 {dimension_numbers = #tpu.dot_dimension_numbers<[1], [0], [0], [1], [0, 0, 1, 1], [], []>} : vector<8x32xf32>, vector<32x128xf32>, vector<8x128xf32> -> vector<8x128xf32>
    %182 = arith.addf %180, %181 : vector<8x128xf32>
    %183 = math.tanh %182 : vector<8x128xf32>
    %184 = vector.extract_strided_slice %183 {offsets = [0, 0], sizes = [8, 32], strides = [1, 1]} : vector<8x128xf32> to vector<8x32xf32>
    %cst_43 = arith.constant 1.000000e+00 : f32
    %185 = vector.broadcast %cst_43 : f32 to vector<8x32xf32>
    %186 = arith.addf %184, %185 : vector<8x32xf32>
    %cst_44 = arith.constant 5.000000e-01 : f32
    %187 = vector.broadcast %cst_44 : f32 to vector<8x32xf32>
    %188 = arith.mulf %187, %186 : vector<8x32xf32>
    %189 = vector.extract_strided_slice %183 {offsets = [0, 32], sizes = [8, 32], strides = [1, 1]} : vector<8x128xf32> to vector<8x32xf32>
    %cst_45 = arith.constant 1.000000e+00 : f32
    %190 = vector.broadcast %cst_45 : f32 to vector<8x32xf32>
    %191 = arith.addf %189, %190 : vector<8x32xf32>
    %cst_46 = arith.constant 5.000000e-01 : f32
    %192 = vector.broadcast %cst_46 : f32 to vector<8x32xf32>
    %193 = arith.mulf %192, %191 : vector<8x32xf32>
    %194 = vector.extract_strided_slice %183 {offsets = [0, 64], sizes = [8, 32], strides = [1, 1]} : vector<8x128xf32> to vector<8x32xf32>
    %195 = vector.extract_strided_slice %183 {offsets = [0, 96], sizes = [8, 32], strides = [1, 1]} : vector<8x128xf32> to vector<8x32xf32>
    %cst_47 = arith.constant 1.000000e+00 : f32
    %196 = vector.broadcast %cst_47 : f32 to vector<8x32xf32>
    %197 = arith.addf %195, %196 : vector<8x32xf32>
    %cst_48 = arith.constant 5.000000e-01 : f32
    %198 = vector.broadcast %cst_48 : f32 to vector<8x32xf32>
    %199 = arith.mulf %198, %197 : vector<8x32xf32>
    %200 = arith.mulf %193, %176 : vector<8x32xf32>
    %201 = arith.mulf %188, %194 : vector<8x32xf32>
    %202 = arith.addf %200, %201 : vector<8x32xf32>
    %203 = math.tanh %202 : vector<8x32xf32>
    %204 = arith.mulf %199, %203 : vector<8x32xf32>
    %205 = vector.extract_strided_slice %1 {offsets = [4, 0, 0], sizes = [1, 8, 1], strides = [1, 1, 1]} : vector<8x8x1xf32> to vector<1x8x1xf32>
    %206 = vector.shape_cast %205 : vector<1x8x1xf32> to vector<8x1xf32>
    %207 = arith.subf %204, %172 : vector<8x32xf32>
    %208 = vector.broadcast %206 : vector<8x1xf32> to vector<8x32xf32>
    %209 = arith.mulf %208, %207 : vector<8x32xf32>
    %210 = arith.addf %172, %209 : vector<8x32xf32>
    %211 = arith.subf %202, %176 : vector<8x32xf32>
    %212 = vector.broadcast %206 : vector<8x1xf32> to vector<8x32xf32>
    %213 = arith.mulf %212, %211 : vector<8x32xf32>
    %214 = arith.addf %176, %213 : vector<8x32xf32>
    %215 = vector.broadcast %206 : vector<8x1xf32> to vector<8x32xf32>
    %216 = arith.mulf %204, %215 : vector<8x32xf32>
    %217 = vector.extract_strided_slice %24 {offsets = [5, 0, 0], sizes = [1, 8, 128], strides = [1, 1, 1]} : vector<8x8x128xf32> to vector<1x8x128xf32>
    %218 = vector.shape_cast %217 : vector<1x8x128xf32> to vector<8x128xf32>
    %cst_49 = arith.constant dense<0.000000e+00> : vector<8x128xf32>
    %219 = tpu.matmul %210, %13, %cst_49 {dimension_numbers = #tpu.dot_dimension_numbers<[1], [0], [0], [1], [0, 0, 1, 1], [], []>} : vector<8x32xf32>, vector<32x128xf32>, vector<8x128xf32> -> vector<8x128xf32>
    %220 = arith.addf %218, %219 : vector<8x128xf32>
    %221 = math.tanh %220 : vector<8x128xf32>
    %222 = vector.extract_strided_slice %221 {offsets = [0, 0], sizes = [8, 32], strides = [1, 1]} : vector<8x128xf32> to vector<8x32xf32>
    %cst_50 = arith.constant 1.000000e+00 : f32
    %223 = vector.broadcast %cst_50 : f32 to vector<8x32xf32>
    %224 = arith.addf %222, %223 : vector<8x32xf32>
    %cst_51 = arith.constant 5.000000e-01 : f32
    %225 = vector.broadcast %cst_51 : f32 to vector<8x32xf32>
    %226 = arith.mulf %225, %224 : vector<8x32xf32>
    %227 = vector.extract_strided_slice %221 {offsets = [0, 32], sizes = [8, 32], strides = [1, 1]} : vector<8x128xf32> to vector<8x32xf32>
    %cst_52 = arith.constant 1.000000e+00 : f32
    %228 = vector.broadcast %cst_52 : f32 to vector<8x32xf32>
    %229 = arith.addf %227, %228 : vector<8x32xf32>
    %cst_53 = arith.constant 5.000000e-01 : f32
    %230 = vector.broadcast %cst_53 : f32 to vector<8x32xf32>
    %231 = arith.mulf %230, %229 : vector<8x32xf32>
    %232 = vector.extract_strided_slice %221 {offsets = [0, 64], sizes = [8, 32], strides = [1, 1]} : vector<8x128xf32> to vector<8x32xf32>
    %233 = vector.extract_strided_slice %221 {offsets = [0, 96], sizes = [8, 32], strides = [1, 1]} : vector<8x128xf32> to vector<8x32xf32>
    %cst_54 = arith.constant 1.000000e+00 : f32
    %234 = vector.broadcast %cst_54 : f32 to vector<8x32xf32>
    %235 = arith.addf %233, %234 : vector<8x32xf32>
    %cst_55 = arith.constant 5.000000e-01 : f32
    %236 = vector.broadcast %cst_55 : f32 to vector<8x32xf32>
    %237 = arith.mulf %236, %235 : vector<8x32xf32>
    %238 = arith.mulf %231, %214 : vector<8x32xf32>
    %239 = arith.mulf %226, %232 : vector<8x32xf32>
    %240 = arith.addf %238, %239 : vector<8x32xf32>
    %241 = math.tanh %240 : vector<8x32xf32>
    %242 = arith.mulf %237, %241 : vector<8x32xf32>
    %243 = vector.extract_strided_slice %1 {offsets = [5, 0, 0], sizes = [1, 8, 1], strides = [1, 1, 1]} : vector<8x8x1xf32> to vector<1x8x1xf32>
    %244 = vector.shape_cast %243 : vector<1x8x1xf32> to vector<8x1xf32>
    %245 = arith.subf %242, %210 : vector<8x32xf32>
    %246 = vector.broadcast %244 : vector<8x1xf32> to vector<8x32xf32>
    %247 = arith.mulf %246, %245 : vector<8x32xf32>
    %248 = arith.addf %210, %247 : vector<8x32xf32>
    %249 = arith.subf %240, %214 : vector<8x32xf32>
    %250 = vector.broadcast %244 : vector<8x1xf32> to vector<8x32xf32>
    %251 = arith.mulf %250, %249 : vector<8x32xf32>
    %252 = arith.addf %214, %251 : vector<8x32xf32>
    %253 = vector.broadcast %244 : vector<8x1xf32> to vector<8x32xf32>
    %254 = arith.mulf %242, %253 : vector<8x32xf32>
    %255 = vector.extract_strided_slice %24 {offsets = [6, 0, 0], sizes = [1, 8, 128], strides = [1, 1, 1]} : vector<8x8x128xf32> to vector<1x8x128xf32>
    %256 = vector.shape_cast %255 : vector<1x8x128xf32> to vector<8x128xf32>
    %cst_56 = arith.constant dense<0.000000e+00> : vector<8x128xf32>
    %257 = tpu.matmul %248, %13, %cst_56 {dimension_numbers = #tpu.dot_dimension_numbers<[1], [0], [0], [1], [0, 0, 1, 1], [], []>} : vector<8x32xf32>, vector<32x128xf32>, vector<8x128xf32> -> vector<8x128xf32>
    %258 = arith.addf %256, %257 : vector<8x128xf32>
    %259 = math.tanh %258 : vector<8x128xf32>
    %260 = vector.extract_strided_slice %259 {offsets = [0, 0], sizes = [8, 32], strides = [1, 1]} : vector<8x128xf32> to vector<8x32xf32>
    %cst_57 = arith.constant 1.000000e+00 : f32
    %261 = vector.broadcast %cst_57 : f32 to vector<8x32xf32>
    %262 = arith.addf %260, %261 : vector<8x32xf32>
    %cst_58 = arith.constant 5.000000e-01 : f32
    %263 = vector.broadcast %cst_58 : f32 to vector<8x32xf32>
    %264 = arith.mulf %263, %262 : vector<8x32xf32>
    %265 = vector.extract_strided_slice %259 {offsets = [0, 32], sizes = [8, 32], strides = [1, 1]} : vector<8x128xf32> to vector<8x32xf32>
    %cst_59 = arith.constant 1.000000e+00 : f32
    %266 = vector.broadcast %cst_59 : f32 to vector<8x32xf32>
    %267 = arith.addf %265, %266 : vector<8x32xf32>
    %cst_60 = arith.constant 5.000000e-01 : f32
    %268 = vector.broadcast %cst_60 : f32 to vector<8x32xf32>
    %269 = arith.mulf %268, %267 : vector<8x32xf32>
    %270 = vector.extract_strided_slice %259 {offsets = [0, 64], sizes = [8, 32], strides = [1, 1]} : vector<8x128xf32> to vector<8x32xf32>
    %271 = vector.extract_strided_slice %259 {offsets = [0, 96], sizes = [8, 32], strides = [1, 1]} : vector<8x128xf32> to vector<8x32xf32>
    %cst_61 = arith.constant 1.000000e+00 : f32
    %272 = vector.broadcast %cst_61 : f32 to vector<8x32xf32>
    %273 = arith.addf %271, %272 : vector<8x32xf32>
    %cst_62 = arith.constant 5.000000e-01 : f32
    %274 = vector.broadcast %cst_62 : f32 to vector<8x32xf32>
    %275 = arith.mulf %274, %273 : vector<8x32xf32>
    %276 = arith.mulf %269, %252 : vector<8x32xf32>
    %277 = arith.mulf %264, %270 : vector<8x32xf32>
    %278 = arith.addf %276, %277 : vector<8x32xf32>
    %279 = math.tanh %278 : vector<8x32xf32>
    %280 = arith.mulf %275, %279 : vector<8x32xf32>
    %281 = vector.extract_strided_slice %1 {offsets = [6, 0, 0], sizes = [1, 8, 1], strides = [1, 1, 1]} : vector<8x8x1xf32> to vector<1x8x1xf32>
    %282 = vector.shape_cast %281 : vector<1x8x1xf32> to vector<8x1xf32>
    %283 = arith.subf %280, %248 : vector<8x32xf32>
    %284 = vector.broadcast %282 : vector<8x1xf32> to vector<8x32xf32>
    %285 = arith.mulf %284, %283 : vector<8x32xf32>
    %286 = arith.addf %248, %285 : vector<8x32xf32>
    %287 = arith.subf %278, %252 : vector<8x32xf32>
    %288 = vector.broadcast %282 : vector<8x1xf32> to vector<8x32xf32>
    %289 = arith.mulf %288, %287 : vector<8x32xf32>
    %290 = arith.addf %252, %289 : vector<8x32xf32>
    %291 = vector.broadcast %282 : vector<8x1xf32> to vector<8x32xf32>
    %292 = arith.mulf %280, %291 : vector<8x32xf32>
    %293 = vector.extract_strided_slice %24 {offsets = [7, 0, 0], sizes = [1, 8, 128], strides = [1, 1, 1]} : vector<8x8x128xf32> to vector<1x8x128xf32>
    %294 = vector.shape_cast %293 : vector<1x8x128xf32> to vector<8x128xf32>
    %cst_63 = arith.constant dense<0.000000e+00> : vector<8x128xf32>
    %295 = tpu.matmul %286, %13, %cst_63 {dimension_numbers = #tpu.dot_dimension_numbers<[1], [0], [0], [1], [0, 0, 1, 1], [], []>} : vector<8x32xf32>, vector<32x128xf32>, vector<8x128xf32> -> vector<8x128xf32>
    %296 = arith.addf %294, %295 : vector<8x128xf32>
    %297 = math.tanh %296 : vector<8x128xf32>
    %298 = vector.extract_strided_slice %297 {offsets = [0, 0], sizes = [8, 32], strides = [1, 1]} : vector<8x128xf32> to vector<8x32xf32>
    %cst_64 = arith.constant 1.000000e+00 : f32
    %299 = vector.broadcast %cst_64 : f32 to vector<8x32xf32>
    %300 = arith.addf %298, %299 : vector<8x32xf32>
    %cst_65 = arith.constant 5.000000e-01 : f32
    %301 = vector.broadcast %cst_65 : f32 to vector<8x32xf32>
    %302 = arith.mulf %301, %300 : vector<8x32xf32>
    %303 = vector.extract_strided_slice %297 {offsets = [0, 32], sizes = [8, 32], strides = [1, 1]} : vector<8x128xf32> to vector<8x32xf32>
    %cst_66 = arith.constant 1.000000e+00 : f32
    %304 = vector.broadcast %cst_66 : f32 to vector<8x32xf32>
    %305 = arith.addf %303, %304 : vector<8x32xf32>
    %cst_67 = arith.constant 5.000000e-01 : f32
    %306 = vector.broadcast %cst_67 : f32 to vector<8x32xf32>
    %307 = arith.mulf %306, %305 : vector<8x32xf32>
    %308 = vector.extract_strided_slice %297 {offsets = [0, 64], sizes = [8, 32], strides = [1, 1]} : vector<8x128xf32> to vector<8x32xf32>
    %309 = vector.extract_strided_slice %297 {offsets = [0, 96], sizes = [8, 32], strides = [1, 1]} : vector<8x128xf32> to vector<8x32xf32>
    %cst_68 = arith.constant 1.000000e+00 : f32
    %310 = vector.broadcast %cst_68 : f32 to vector<8x32xf32>
    %311 = arith.addf %309, %310 : vector<8x32xf32>
    %cst_69 = arith.constant 5.000000e-01 : f32
    %312 = vector.broadcast %cst_69 : f32 to vector<8x32xf32>
    %313 = arith.mulf %312, %311 : vector<8x32xf32>
    %314 = arith.mulf %307, %290 : vector<8x32xf32>
    %315 = arith.mulf %302, %308 : vector<8x32xf32>
    %316 = arith.addf %314, %315 : vector<8x32xf32>
    %317 = math.tanh %316 : vector<8x32xf32>
    %318 = arith.mulf %313, %317 : vector<8x32xf32>
    %319 = vector.extract_strided_slice %1 {offsets = [7, 0, 0], sizes = [1, 8, 1], strides = [1, 1, 1]} : vector<8x8x1xf32> to vector<1x8x1xf32>
    %320 = vector.shape_cast %319 : vector<1x8x1xf32> to vector<8x1xf32>
    %321 = vector.broadcast %320 : vector<8x1xf32> to vector<8x32xf32>
    %322 = arith.mulf %318, %321 : vector<8x32xf32>
    %323 = vector.shape_cast %64 : vector<8x32xf32> to vector<1x8x32xf32>
    %324 = vector.shape_cast %102 : vector<8x32xf32> to vector<1x8x32xf32>
    %325 = vector.shape_cast %140 : vector<8x32xf32> to vector<1x8x32xf32>
    %326 = vector.shape_cast %178 : vector<8x32xf32> to vector<1x8x32xf32>
    %327 = vector.shape_cast %216 : vector<8x32xf32> to vector<1x8x32xf32>
    %328 = vector.shape_cast %254 : vector<8x32xf32> to vector<1x8x32xf32>
    %329 = vector.shape_cast %292 : vector<8x32xf32> to vector<1x8x32xf32>
    %330 = vector.shape_cast %322 : vector<8x32xf32> to vector<1x8x32xf32>
    %331 = tpu.concatenate %323, %324, %325, %326, %327, %328, %329, %330 in 0 : vector<1x8x32xf32>, vector<1x8x32xf32>, vector<1x8x32xf32>, vector<1x8x32xf32>, vector<1x8x32xf32>, vector<1x8x32xf32>, vector<1x8x32xf32>, vector<1x8x32xf32> -> vector<8x8x32xf32>
    %c0_70 = arith.constant 0 : index
    %c0_71 = arith.constant 0 : index
    %332 = vector.load %arg6[%c0_70, %c0_71] : memref<1x32xf32, #tpu.memory_space<vmem>>, vector<1x32xf32>
    %333 = vector.shape_cast %332 : vector<1x32xf32> to vector<1x1x32xf32>
    %334 = vector.broadcast %333 : vector<1x1x32xf32> to vector<8x8x32xf32>
    %335 = arith.mulf %331, %334 : vector<8x8x32xf32>
    %cst_72 = arith.constant dense<0.000000e+00> : vector<8x8xf32>
    %336 = vector.multi_reduction <add>, %335, %cst_72 [2] : vector<8x8x32xf32> to vector<8x8xf32>
    %c0_73 = arith.constant 0 : index
    %c0_74 = arith.constant 0 : index
    %337 = vector.load %arg7[%c0_73, %c0_74] : memref<1x1xf32, #tpu.memory_space<vmem>>, vector<1x1xf32>
    %338 = vector.broadcast %337 : vector<1x1xf32> to vector<8x8xf32>
    %339 = arith.addf %336, %338 : vector<8x8xf32>
    %c0_75 = arith.constant 0 : index
    %c0_76 = arith.constant 0 : index
    %340 = vector.load %arg8[%c0_75, %c0_76] : memref<8x8xf32, #tpu.memory_space<vmem>>, vector<8x8xf32>
    tpu.vector_store %arg8[%c0_75, %c0_76], %339 {strides = array<i32>} : memref<8x8xf32, #tpu.memory_space<vmem>>, vector<8x8xf32>,
    return
  }
  func.func @transform_0(%arg0: i32) -> (i32, i32, i32) {
    %c0_i32 = arith.constant 0 : i32
    %c0_i32_0 = arith.constant 0 : i32
    %c0_i32_1 = arith.constant 0 : i32
    %c0_i32_2 = arith.constant 0 : i32
    return %c0_i32, %c0_i32_0, %c0_i32_1 : i32, i32, i32
  }
  func.func @transform_1(%arg0: i32) -> (i32, i32, i32) {
    %c0_i32 = arith.constant 0 : i32
    %c0_i32_0 = arith.constant 0 : i32
    %c0_i32_1 = arith.constant 0 : i32
    %c0_i32_2 = arith.constant 0 : i32
    return %c0_i32, %c0_i32_0, %c0_i32_1 : i32, i32, i32
  }
  func.func @transform_2(%arg0: i32) -> (i32, i32) {
    %c0_i32 = arith.constant 0 : i32
    %c0_i32_0 = arith.constant 0 : i32
    %c0_i32_1 = arith.constant 0 : i32
    return %c0_i32, %c0_i32_0 : i32, i32
  }
  func.func @transform_3(%arg0: i32) -> (i32, i32) {
    %c0_i32 = arith.constant 0 : i32
    %c0_i32_0 = arith.constant 0 : i32
    %c0_i32_1 = arith.constant 0 : i32
    return %c0_i32, %c0_i32_0 : i32, i32
  }
  func.func @transform_4(%arg0: i32) -> (i32, i32) {
    %c0_i32 = arith.constant 0 : i32
    %c0_i32_0 = arith.constant 0 : i32
    %c0_i32_1 = arith.constant 0 : i32
    return %c0_i32, %c0_i32_0 : i32, i32
  }
  func.func @transform_5(%arg0: i32) -> (i32, i32) {
    %c0_i32 = arith.constant 0 : i32
    %c0_i32_0 = arith.constant 0 : i32
    %c0_i32_1 = arith.constant 0 : i32
    return %c0_i32, %c0_i32_0 : i32, i32
  }
  func.func @transform_6(%arg0: i32) -> (i32, i32) {
    %c0_i32 = arith.constant 0 : i32
    %c0_i32_0 = arith.constant 0 : i32
    %c0_i32_1 = arith.constant 0 : i32
    return %c0_i32, %c0_i32_0 : i32, i32
  }
  func.func @transform_7(%arg0: i32) -> (i32, i32) {
    %c0_i32 = arith.constant 0 : i32
    %c0_i32_0 = arith.constant 0 : i32
    %c0_i32_1 = arith.constant 0 : i32
    return %c0_i32, %c0_i32_0 : i32, i32
  }
}

</mosaic_0001>

<bundles_post_ra>
// kernel: tpu_custom_call.1
= control target key start
LH: loop header
LB: loop body
LE: loop exit
PB: predicated region body
PF: predicated region fallthrough
CT: control target
= control target key end

     0   :  { %s1719_s0 = inlined_call_operand.vmem [shape: f32[8,8,1], index: 0, kind: input, shape index: {}]   ;;  %s1720_s1 = inlined_call_operand.vmem [shape: f32[8,8,1], index: 1, kind: input, shape index: {}]   ;;  %s1721_s2 = inlined_call_operand.vmem [shape: f32[1,128], index: 2, kind: input, shape index: {}]   ;;  %s1722_s3 = inlined_call_operand.vmem [shape: f32[32,128], index: 3, kind: input, shape index: {}]   ;;  %s1723_s4 = inlined_call_operand.vmem [shape: f32[1,128], index: 4, kind: input, shape index: {}]   ;;  %s1724_s5 = inlined_call_operand.vmem [shape: f32[1,32], index: 5, kind: input, shape index: {}]   ;;  %s1725_s6 = inlined_call_operand.<no memory space> [shape: f32[1,1], index: 6, kind: input, shape index: {}]   ;;  %s1726_s7 = inlined_call_operand.hbm [shape: f32[8,8], index: 7, kind: output, shape index: {}]  }
   0x1   :  { %v12_v0 = vstv %s1725_s6 }
   0x2   :  { %13 = vst [vmem:[#allocation2] sm:$0x1] %v12_v0 }
   0x3   :  { %v45_v1 = vlaneseq  ;;  %v1399_v2 = vmov 0.0|0.0   ;;  %v29_v3 = vld [vmem:[%s1719_s0] sm:$0xff]  ;;  %vm1400_vm0 = vmmov 0   ;;  %v1401_v5 = vmov 0.0  }
   0x4   :  { %1284 = vmatprep.subr.bf16.mxu0 %v1399_v2  ;;  %1290 = vmatprep.subr.bf16.mxu1 %v1399_v2  ;;  %v1402_v6 = vmov 0  }
   0x5   :  { %v1456_v4 = vand.u32 127, %v45_v1  ;;  %1204 = vmatprep.mubr.msk.f32.mxu0 %vm1400_vm0, %v1401_v5  ;;  %1341 = vset.pattern.permute.xlu0 %v1402_v6 }
   0x6   :  { %14 = vsyncpa [#allocation4], 0  ;;  %v51_v7 = vld [vmem:[%s1722_s3] sm:$0xff]  ;;  %65 = vperm.xlu0 %1341, %v29_v3   ;;  %1342 = vset.pattern.permute.xlu1 %v1402_v6  ;;  %v52_v8 = vld [vmem:[%s1722_s3 + $0x8] sm:$0xff]  ;;  %v1403_v11 = vmov 0.5   ;;  %v1495_v19 = vshrl.u32 %v45_v1, 7 }
   0x7   :  { %vm47_vm1 = vcmp.ge.s32.totalorder %v1456_v4, 64  ;;  %vm48_vm2 = vcmp.lt.s32.totalorder %v1456_v4, 96  ;;  %v53_v9 = vld [vmem:[%s1722_s3 + $0x10] sm:$0xff]  ;;  %v54_v10 = vld [vmem:[%s1722_s3 + $0x18] sm:$0xff]  ;;  %1215 = vmatprep.mubr.msk.f32.mxu1 %vm1400_vm0, %v1401_v5  ;;  %v59_v20 = vld [vmem:[%s1721_s2] sm:$0x1] }
   0x8   :  { %vm49_vm3 = vmand %vm47_vm1, %vm48_vm2  ;;  %v106_v22 = vsub.s32 0, %v1495_v19  ;;  %v61_v23 = vld [vmem:[%s1723_s4] sm:$0x1]  ;;  %s1404_s2 = smov 64   ;;  %s1405_s4 = smov 32   ;;  %v30_v43 = vld [vmem:[%s1719_s0 + $0x8] sm:$0xff] }
   0x9   :  { %v50_v12 = vsel %vm49_vm3, 1.0, %v1403_v11  ;;  %v37_v38 = vld [vmem:[%s1720_s1] sm:$0xff]  ;;  %vm131_vm4 = vcmask 261120   ;;  %v38_v56 = vld [vmem:[%s1720_s1 + $0x8] sm:$0xff]  ;;  %v31_v3 = vld [vmem:[%s1719_s0 + $0x10] sm:$0xff]  ;;  %s1406_s21 = smov 96  }
   0xa   :  { %v55_v13 = vmul.f32 %v51_v7, %v50_v12  ;;  %v56_v14 = vmul.f32 %v52_v8, %v50_v12  ;;  %v57_v15 = vmul.f32 %v53_v9, %v50_v12  ;;  %v58_v16 = vmul.f32 %v54_v10, %v50_v12 }
   0xb   :  { %v60_v21 = vmul.f32 %v59_v20, %v50_v12  ;;  %v62_v25 = vmul.f32 %v61_v23, %v50_v12  ;;  %v39_v23 = vld [vmem:[%s1720_s1 + $0x10] sm:$0xff]  ;;  %vm1116_vm5 = vcmask 1041409   ;;  %vm1118_vm6 = vcmask 1042434  }
   0xc   :  { %v1476_v17 = vpack.c.bf16 %v56_v14, %v55_v13  ;;  %v1479_v18 = vpack.c.bf16 %v58_v16, %v57_v15  ;;  %vm1120_vm7 = vcmask 1043459   ;;  %vm1122_vm8 = vcmask 1044484  }
   0xd   :  { %v1504_v24 = vrot.slane %v60_v21, %v106_v22  ;;  %v1507_v28 = vrot.slane %v62_v25, %v106_v22  ;;  %vm1124_vm9 = vcmask 1045509   ;;  %vm1126_vm10 = vcmask 1046534  }
   0xe   :  { %1286 = vmatpush3.bf16.msra.mxu0 %v1476_v17  ;;  %1292 = vmatpush3.bf16.msra.mxu1 %v1476_v17  ;;  %vm1128_vm11 = vcmask 1047559   ;;  %vm1131_vm12 = vcmask 64512  }
   0xf   :  { %1287 = vmatprep.subr.bf16.mxu0 %v1399_v2  ;;  %1293 = vmatprep.subr.bf16.mxu1 %v1399_v2 }
  0x12   :  { %1289 = vmatpush3.bf16.msra.mxu0 %v1479_v18  ;;  %1295 = vmatpush3.bf16.msra.mxu1 %v1479_v18 }
  0x13   :  { %1296 = vmatprep.subr.bf16.mxu0 %v1399_v2  ;;  %1302 = vmatprep.subr.bf16.mxu1 %v1399_v2 }
  0x15   :  { %1205 = vmatmul.mubr.f32.vlgmr.msra.gmra.mrb[0].mxu0 %v1401_v5 }
  0x16   :  { %1298 = vmatpush3.bf16.msra.mxu0 %v1476_v17  ;;  %1226 = vmatprep.mubr.msk.f32.mxu0 %vm1400_vm0, %v1401_v5 }
  0x17   :  { %1299 = vmatprep.subr.bf16.mxu0 %v1399_v2 }
  0x1a   :  { %1301 = vmatpush3.bf16.msra.mxu0 %v1479_v18 }
  0x1b   :  { %1308 = vmatprep.subr.bf16.mxu0 %v1399_v2 }
  0x85   :  { %v66_v26 = vpop.permute.xlu0 %65 }
  0x86   :  { %v109_v27 = vmul.f32 %v1504_v24, %v66_v26 }
  0x88   :  { %v123_v29 = vadd.f32 %v1507_v28, %v109_v27 }
  0xe8   :  { %v201_v30 = vpop.f32.mrb[0].mxu0 }
  0xe9   :  { %v205_v31 = vadd.f32 %v201_v30, %v123_v29  ;;  %v1206_v32 = vpop.f32.mrb[1].mxu0 }
  0xeb   :  { %1343 = vtanh.f32 %v205_v31 }
  0xf5   :  { %v1344_v33 = vpop.eup %1343 }
  0xf6   :  { %211 = vrot.lane.b32.xlu0 %v1344_v33, %s1404_s2  ;;  %v207_v34 = vadd.f32 1.0, %v1344_v33 }
  0xf8   :  { %v208_v35 = vmul.f32 0.5, %v207_v34 }
  0xfa   :  { %v209_v39 = vmul.f32 0.0, %v208_v35 }
 0x168   :  { %v212_v36 = vpop.permute.xlu0 %211 }
 0x169   :  { %v214_v37 = vmul.f32 %v212_v36, %v208_v35 }
 0x16b   :  { %216 = vrot.lane.b32.xlu1 %v214_v37, %s1405_s4  ;;  %v32_v37 = vld [vmem:[%s1719_s0 + $0x18] sm:$0xff] }
 0x16f   :  { %228 = vperm.xlu1 %1342, %v37_v38  }
 0x1dd   :  { %v217_v40 = vpop.permute.xlu1 %216 }
 0x1de   :  { %v219_v41 = vadd.f32 %v217_v40, %v209_v39 }
 0x1e0   :  { %1345 = vtanh.f32 %v219_v41 }
 0x1ea   :  { %v1346_v42 = vpop.eup %1345 }
 0x1eb   :  { %222 = vrot.lane.b32.xlu0 %v1346_v42, %s1404_s2 }
 0x1ee   :  { %v229_v46 = vpop.permute.xlu1 %228 }
 0x1ef   :  { %70 = vperm.xlu0 %1341, %v30_v43   ;;  %v233_v61 = vmul.f32 %v229_v46, %v219_v41 }
 0x25d   :  { %v223_v44 = vpop.permute.xlu0 %222 }
 0x25e   :  { %v225_v45 = vmul.f32 %v223_v44, %v208_v35 }
 0x260   :  { %v1519_v47 = vmul.f32 %v229_v46, %v225_v45 }
 0x262   :  { %236 = vrot.lane.b32.xlu1 %v1519_v47, %s1405_s4 }
 0x26e   :  { %v71_v49 = vpop.permute.xlu0 %70 }
 0x26f   :  { %v110_v50 = vmul.f32 %v1504_v24, %v71_v49 }
 0x271   :  { %v124_v51 = vadd.f32 %v1507_v28, %v110_v50 }
 0x2d4   :  { %v237_v48 = vpop.permute.xlu1 %236 }
 0x2d5   :  { %1216 = vmatmul.mubr.msk.f32.vlgmr.msra.gmra.mrb[0].mxu1 %vm131_vm4, %v237_v48 }
 0x2d6   :  { %1304 = vmatpush3.bf16.msra.mxu1 %v1476_v17  ;;  %1237 = vmatprep.mubr.msk.f32.mxu1 %vm1400_vm0, %v1401_v5 }
 0x2d7   :  { %1305 = vmatprep.subr.bf16.mxu1 %v1399_v2 }
 0x2da   :  { %1307 = vmatpush3.bf16.msra.mxu1 %v1479_v18 }
 0x2db   :  { %1314 = vmatprep.subr.bf16.mxu1 %v1399_v2 }
 0x3a8   :  { %v306_v52 = vpop.f32.mrb[0].mxu1 }
 0x3a9   :  { %v310_v53 = vadd.f32 %v306_v52, %v124_v51  ;;  %v1217_v54 = vpop.f32.mrb[1].mxu1 }
 0x3ab   :  { %1347 = vtanh.f32 %v310_v53  ;;  %v40_v53 = vld [vmem:[%s1720_s1 + $0x18] sm:$0xff] }
 0x3b5   :  { %v1348_v55 = vpop.eup %1347 }
 0x3b6   :  { %316 = vrot.lane.b32.xlu1 %v1348_v55, %s1404_s2  ;;  %v312_v57 = vadd.f32 1.0, %v1348_v55 }
 0x3b8   :  { %v313_v58 = vmul.f32 0.5, %v312_v57 }
 0x3ba   :  { %334 = vperm.xlu1 %1342, %v38_v56   ;;  %v314_v62 = vmul.f32 %v313_v58, %v233_v61 }
 0x428   :  { %v317_v59 = vpop.permute.xlu1 %316 }
 0x429   :  { %v319_v60 = vmul.f32 %v317_v59, %v313_v58 }
 0x42b   :  { %321 = vrot.lane.b32.xlu0 %v319_v60, %s1405_s4 }
 0x439   :  { %v1545_v9 = vpop.permute.xlu1 %334 }
 0x49d   :  { %v322_v63 = vpop.permute.xlu0 %321 }
 0x49e   :  { %v324_v0 = vadd.f32 %v322_v63, %v314_v62 }
 0x4a0   :  { %1349 = vtanh.f32 %v324_v0  ;;  %v339_v30 = vsub.f32 %v324_v0, %v233_v61 }
 0x4a2   :  { %v340_v31 = vmul.f32 %v339_v30, %v1545_v9 }
 0x4a4   :  { %v341_v32 = vadd.f32 %v340_v31, %v233_v61 }
 0x4aa   :  { %v1350_v1 = vpop.eup %1349 }
 0x4ab   :  { %327 = vrot.lane.b32.xlu0 %v1350_v1, %s1404_s2  ;;  %v33_v1 = vld [vmem:[%s1719_s0 + $0x20] sm:$0xff] }
 0x4af   :  { %75 = vperm.xlu0 %1341, %v31_v3  }
 0x51d   :  { %v328_v6 = vpop.permute.xlu0 %327 }
 0x51e   :  { %v1541_v7 = vmul.f32 %v328_v6, %v313_v58 }
 0x520   :  { %v331_v8 = vsub.f32 %v1541_v7, %v1519_v47 }
 0x522   :  { %v337_v10 = vmul.f32 %v1545_v9, %v331_v8 }
 0x524   :  { %v338_v11 = vadd.f32 %v337_v10, %v1519_v47 }
 0x526   :  { %344 = vrot.lane.b32.xlu1 %v338_v11, %s1405_s4 }
 0x52e   :  { %v76_v13 = vpop.permute.xlu0 %75 }
 0x52f   :  { %v111_v14 = vmul.f32 %v1504_v24, %v76_v13 }
 0x531   :  { %v125_v15 = vadd.f32 %v1507_v28, %v111_v14 }
 0x598   :  { %v345_v12 = vpop.permute.xlu1 %344 }
 0x599   :  { %1227 = vmatmul.mubr.msk.f32.vlgmr.msra.gmra.mrb[2].mxu0 %vm131_vm4, %v345_v12 }
 0x59a   :  { %1310 = vmatpush3.bf16.msra.mxu0 %v1476_v17  ;;  %1248 = vmatprep.mubr.msk.f32.mxu0 %vm1400_vm0, %v1401_v5 }
 0x59b   :  { %1311 = vmatprep.subr.bf16.mxu0 %v1399_v2 }
 0x59e   :  { %1313 = vmatpush3.bf16.msra.mxu0 %v1479_v18 }
 0x59f   :  { %1320 = vmatprep.subr.bf16.mxu0 %v1399_v2 }
 0x66c   :  { %v414_v16 = vpop.f32.mrb[2].mxu0 }
 0x66d   :  { %v418_v20 = vadd.f32 %v414_v16, %v125_v15  ;;  %v1228_v21 = vpop.f32.mrb[3].mxu0 }
 0x66f   :  { %1351 = vtanh.f32 %v418_v20 }
 0x679   :  { %v1352_v22 = vpop.eup %1351 }
 0x67a   :  { %424 = vrot.lane.b32.xlu1 %v1352_v22, %s1404_s2  ;;  %v420_v25 = vadd.f32 1.0, %v1352_v22 }
 0x67c   :  { %v421_v26 = vmul.f32 0.5, %v420_v25  ;;  %v41_v25 = vld [vmem:[%s1720_s1 + $0x20] sm:$0xff] }
 0x67e   :  { %442 = vperm.xlu1 %1342, %v39_v23   ;;  %v422_v33 = vmul.f32 %v421_v26, %v341_v32 }
 0x6ec   :  { %v425_v27 = vpop.permute.xlu1 %424 }
 0x6ed   :  { %v427_v29 = vmul.f32 %v425_v27, %v421_v26 }
 0x6ef   :  { %429 = vrot.lane.b32.xlu0 %v427_v29, %s1405_s4 }
 0x6fd   :  { %v1572_v41 = vpop.permute.xlu1 %442 }
 0x761   :  { %v430_v34 = vpop.permute.xlu0 %429 }
 0x762   :  { %v432_v35 = vadd.f32 %v430_v34, %v422_v33 }
 0x764   :  { %1353 = vtanh.f32 %v432_v35  ;;  %v447_v58 = vsub.f32 %v432_v35, %v341_v32 }
 0x766   :  { %v448_v59 = vmul.f32 %v447_v58, %v1572_v41 }
 0x768   :  { %v449_v60 = vadd.f32 %v448_v59, %v341_v32 }
 0x76e   :  { %v1354_v36 = vpop.eup %1353 }
 0x76f   :  { %435 = vrot.lane.b32.xlu0 %v1354_v36, %s1404_s2 }
 0x773   :  { %80 = vperm.xlu0 %1341, %v32_v37  }
 0x7e1   :  { %v436_v38 = vpop.permute.xlu0 %435 }
 0x7e2   :  { %v1569_v39 = vmul.f32 %v436_v38, %v421_v26  ;;  %v34_v38 = vld [vmem:[%s1719_s0 + $0x28] sm:$0xff] }
 0x7e4   :  { %v439_v40 = vsub.f32 %v1569_v39, %v338_v11 }
 0x7e6   :  { %v445_v42 = vmul.f32 %v1572_v41, %v439_v40 }
 0x7e8   :  { %v446_v43 = vadd.f32 %v445_v42, %v338_v11 }
 0x7ea   :  { %452 = vrot.lane.b32.xlu1 %v446_v43, %s1405_s4 }
 0x7f2   :  { %v81_v45 = vpop.permute.xlu0 %80 }
 0x7f3   :  { %v112_v46 = vmul.f32 %v1504_v24, %v81_v45 }
 0x7f5   :  { %v126_v48 = vadd.f32 %v1507_v28, %v112_v46 }
 0x85c   :  { %v453_v44 = vpop.permute.xlu1 %452 }
 0x85d   :  { %1238 = vmatmul.mubr.msk.f32.vlgmr.msra.gmra.mrb[2].mxu1 %vm131_vm4, %v453_v44 }
 0x85e   :  { %1316 = vmatpush3.bf16.msra.mxu1 %v1476_v17  ;;  %1259 = vmatprep.mubr.msk.f32.mxu1 %vm1400_vm0, %v1401_v5 }
 0x85f   :  { %1317 = vmatprep.subr.bf16.mxu1 %v1399_v2 }
 0x862   :  { %1319 = vmatpush3.bf16.msra.mxu1 %v1479_v18 }
 0x863   :  { %1326 = vmatprep.subr.bf16.mxu1 %v1399_v2 }
 0x930   :  { %v522_v49 = vpop.f32.mrb[2].mxu1 }
 0x931   :  { %v526_v50 = vadd.f32 %v522_v49, %v126_v48  ;;  %v1239_v51 = vpop.f32.mrb[3].mxu1 }
 0x933   :  { %1355 = vtanh.f32 %v526_v50 }
 0x93d   :  { %v1356_v52 = vpop.eup %1355 }
 0x93e   :  { %532 = vrot.lane.b32.xlu1 %v1356_v52, %s1404_s2  ;;  %v528_v54 = vadd.f32 1.0, %v1356_v52 }
 0x940   :  { %v529_v55 = vmul.f32 0.5, %v528_v54 }
 0x942   :  { %550 = vperm.xlu1 %1342, %v40_v53   ;;  %v530_v61 = vmul.f32 %v529_v55, %v449_v60 }
 0x9b0   :  { %v533_v56 = vpop.permute.xlu1 %532 }
 0x9b1   :  { %v535_v57 = vmul.f32 %v533_v56, %v529_v55 }
 0x9b3   :  { %537 = vrot.lane.b32.xlu0 %v535_v57, %s1405_s4 }
 0x9c1   :  { %v1598_v10 = vpop.permute.xlu1 %550 }
 0xa25   :  { %v538_v62 = vpop.permute.xlu0 %537 }
 0xa26   :  { %v540_v63 = vadd.f32 %v538_v62, %v530_v61 }
 0xa28   :  { %1357 = vtanh.f32 %v540_v63  ;;  %v555_v31 = vsub.f32 %v540_v63, %v449_v60 }
 0xa2a   :  { %v556_v32 = vmul.f32 %v555_v31, %v1598_v10 }
 0xa2c   :  { %v557_v33 = vadd.f32 %v556_v32, %v449_v60 }
 0xa32   :  { %v1358_v0 = vpop.eup %1357 }
 0xa33   :  { %543 = vrot.lane.b32.xlu0 %v1358_v0, %s1404_s2  ;;  %v35_v0 = vld [vmem:[%s1719_s0 + $0x30] sm:$0xff] }
 0xa37   :  { %85 = vperm.xlu0 %1341, %v33_v1  }
 0xaa5   :  { %v544_v3 = vpop.permute.xlu0 %543 }
 0xaa6   :  { %v1595_v6 = vmul.f32 %v544_v3, %v529_v55 }
 0xaa8   :  { %v547_v8 = vsub.f32 %v1595_v6, %v446_v43 }
 0xaaa   :  { %v553_v11 = vmul.f32 %v1598_v10, %v547_v8 }
 0xaac   :  { %v554_v12 = vadd.f32 %v553_v11, %v446_v43 }
 0xaae   :  { %560 = vrot.lane.b32.xlu1 %v554_v12, %s1405_s4 }
 0xab6   :  { %v86_v14 = vpop.permute.xlu0 %85 }
 0xab7   :  { %v113_v15 = vmul.f32 %v1504_v24, %v86_v14 }
 0xab9   :  { %v127_v16 = vadd.f32 %v1507_v28, %v113_v15 }
 0xb20   :  { %v561_v13 = vpop.permute.xlu1 %560 }
 0xb21   :  { %1249 = vmatmul.mubr.msk.f32.vlgmr.msra.gmra.mrb[4].mxu0 %vm131_vm4, %v561_v13 }
 0xb22   :  { %1322 = vmatpush3.bf16.msra.mxu0 %v1476_v17  ;;  %1270 = vmatprep.mubr.msk.f32.mxu0 %vm1400_vm0, %v1401_v5 }
 0xb23   :  { %1323 = vmatprep.subr.bf16.mxu0 %v1399_v2 }
 0xb26   :  { %1325 = vmatpush3.bf16.msra.mxu0 %v1479_v18 }
 0xbf4   :  { %v630_v20 = vpop.f32.mrb[4].mxu0 }
 0xbf5   :  { %v634_v21 = vadd.f32 %v630_v20, %v127_v16  ;;  %v1250_v22 = vpop.f32.mrb[5].mxu0 }
 0xbf7   :  { %1359 = vtanh.f32 %v634_v21 }
 0xc01   :  { %v1360_v23 = vpop.eup %1359 }
 0xc02   :  { %640 = vrot.lane.b32.xlu1 %v1360_v23, %s1404_s2  ;;  %v636_v26 = vadd.f32 1.0, %v1360_v23 }
 0xc04   :  { %v637_v27 = vmul.f32 0.5, %v636_v26  ;;  %v43_v26 = vld [vmem:[%s1720_s1 + $0x30] sm:$0xff] }
 0xc06   :  { %658 = vperm.xlu1 %1342, %v41_v25   ;;  %v638_v34 = vmul.f32 %v637_v27, %v557_v33 }
 0xc74   :  { %v641_v29 = vpop.permute.xlu1 %640 }
 0xc75   :  { %v643_v30 = vmul.f32 %v641_v29, %v637_v27 }
 0xc77   :  { %645 = vrot.lane.b32.xlu0 %v643_v30, %s1405_s4 }
 0xc85   :  { %v1623_v44 = vpop.permute.xlu1 %658 }
 0xce9   :  { %v646_v35 = vpop.permute.xlu0 %645 }
 0xcea   :  { %v648_v36 = vadd.f32 %v646_v35, %v638_v34 }
 0xcec   :  { %1361 = vtanh.f32 %v648_v36  ;;  %v663_v57 = vsub.f32 %v648_v36, %v557_v33 }
 0xcee   :  { %v664_v58 = vmul.f32 %v663_v57, %v1623_v44 }
 0xcf0   :  { %v665_v59 = vadd.f32 %v664_v58, %v557_v33 }
 0xcf6   :  { %v1362_v37 = vpop.eup %1361 }
 0xcf7   :  { %651 = vrot.lane.b32.xlu0 %v1362_v37, %s1404_s2 }
 0xcfb   :  { %90 = vperm.xlu0 %1341, %v34_v38  }
 0xd69   :  { %v652_v40 = vpop.permute.xlu0 %651 }
 0xd6a   :  { %v1620_v42 = vmul.f32 %v652_v40, %v637_v27  ;;  %v36_v40 = vld [vmem:[%s1719_s0 + $0x38] sm:$0xff] }
 0xd6c   :  { %v655_v43 = vsub.f32 %v1620_v42, %v554_v12 }
 0xd6e   :  { %v661_v45 = vmul.f32 %v1623_v44, %v655_v43 }
 0xd70   :  { %v662_v46 = vadd.f32 %v661_v45, %v554_v12 }
 0xd72   :  { %668 = vrot.lane.b32.xlu1 %v662_v46, %s1405_s4 }
 0xd7a   :  { %v91_v49 = vpop.permute.xlu0 %90 }
 0xd7b   :  { %v114_v50 = vmul.f32 %v1504_v24, %v91_v49 }
 0xd7d   :  { %v128_v51 = vadd.f32 %v1507_v28, %v114_v50 }
 0xde4   :  { %v669_v48 = vpop.permute.xlu1 %668 }
 0xde5   :  { %1260 = vmatmul.mubr.msk.f32.vlgmr.msra.gmra.mrb[4].mxu1 %vm131_vm4, %v669_v48 }
 0xde6   :  { %1328 = vmatpush3.bf16.msra.mxu1 %v1476_v17  ;;  %1281 = vmatprep.mubr.msk.f32.mxu1 %vm1400_vm0, %v1401_v5  ;;  %v42_v5 = vld [vmem:[%s1720_s1 + $0x28] sm:$0xff] }
 0xde7   :  { %1329 = vmatprep.subr.bf16.mxu1 %v1399_v2 }
 0xdea   :  { %1331 = vmatpush3.bf16.msra.mxu1 %v1479_v18 }
 0xeb8   :  { %v738_v52 = vpop.f32.mrb[4].mxu1 }
 0xeb9   :  { %v742_v53 = vadd.f32 %v738_v52, %v128_v51  ;;  %v1261_v54 = vpop.f32.mrb[5].mxu1 }
 0xebb   :  { %1363 = vtanh.f32 %v742_v53 }
 0xec5   :  { %v1364_v55 = vpop.eup %1363 }
 0xec6   :  { %748 = vrot.lane.b32.xlu1 %v1364_v55, %s1404_s2  ;;  %v744_v2 = vadd.f32 1.0, %v1364_v55 }
 0xec8   :  { %v745_v17 = vmul.f32 0.5, %v744_v2 }
 0xeca   :  { %766 = vperm.xlu1 %1342, %v42_v5   ;;  %v746_v60 = vmul.f32 %v745_v17, %v665_v59 }
 0xf38   :  { %v749_v18 = vpop.permute.xlu1 %748 }
 0xf39   :  { %v751_v56 = vmul.f32 %v749_v18, %v745_v17  ;;  %v44_v18 = vld [vmem:[%s1720_s1 + $0x38] sm:$0xff]  ;;  %s1407_s1 = smov [#allocation3]  }
 0xf3b   :  { %753 = vrot.lane.b32.xlu0 %v751_v56, %s1405_s4 }
 0xf49   :  { %v1648_v11 = vpop.permute.xlu1 %766 }
 0xfad   :  { %v754_v61 = vpop.permute.xlu0 %753 }
 0xfae   :  { %v756_v62 = vadd.f32 %v754_v61, %v746_v60 }
 0xfb0   :  { %1365 = vtanh.f32 %v756_v62  ;;  %v771_v32 = vsub.f32 %v756_v62, %v665_v59 }
 0xfb2   :  { %v772_v33 = vmul.f32 %v771_v32, %v1648_v11 }
 0xfb4   :  { %v773_v34 = vadd.f32 %v772_v33, %v665_v59 }
 0xfba   :  { %v1366_v63 = vpop.eup %1365 }
 0xfbb   :  { %759 = vrot.lane.b32.xlu0 %v1366_v63, %s1404_s2 }
 0xfbf   :  { %95 = vperm.xlu0 %1341, %v35_v0  }
0x102d   :  { %v760_v1 = vpop.permute.xlu0 %759 }
0x102e   :  { %v1645_v3 = vmul.f32 %v760_v1, %v745_v17 }
0x1030   :  { %v763_v8 = vsub.f32 %v1645_v3, %v662_v46 }
0x1032   :  { %v769_v12 = vmul.f32 %v1648_v11, %v763_v8 }
0x1034   :  { %v770_v13 = vadd.f32 %v769_v12, %v662_v46  ;;  %v450_v12 = vmul.f32 %v1572_v41, %v1569_v39  ;;  %v558_v41 = vmul.f32 %v1598_v10, %v1595_v6 }
0x1036   :  { %776 = vrot.lane.b32.xlu1 %v770_v13, %s1405_s4 }
0x103e   :  { %v96_v15 = vpop.permute.xlu0 %95 }
0x103f   :  { %v115_v16 = vmul.f32 %v1504_v24, %v96_v15 }
0x1041   :  { %v129_v20 = vadd.f32 %v1507_v28, %v115_v16 }
0x10a8   :  { %v777_v14 = vpop.permute.xlu1 %776 }
0x10a9   :  { %1271 = vmatmul.mubr.msk.f32.vlgmr.msra.gmra.mrb[6].mxu0 %vm131_vm4, %v777_v14  ;;  %v666_v14 = vmul.f32 %v1623_v44, %v1620_v42  ;;  %v774_v44 = vmul.f32 %v1648_v11, %v1645_v3 }
0x117c   :  { %v846_v21 = vpop.f32.mrb[6].mxu0 }
0x117d   :  { %v850_v22 = vadd.f32 %v846_v21, %v129_v20  ;;  %v1272_v23 = vpop.f32.mrb[7].mxu0  ;;  %v342_v20 = vmul.f32 %v1545_v9, %v1541_v7 }
0x117f   :  { %1367 = vtanh.f32 %v850_v22 }
0x1189   :  { %v1368_v25 = vpop.eup %1367 }
0x118a   :  { %856 = vrot.lane.b32.xlu1 %v1368_v25, %s1404_s2  ;;  %v852_v27 = vadd.f32 1.0, %v1368_v25 }
0x118c   :  { %v853_v29 = vmul.f32 0.5, %v852_v27 }
0x118e   :  { %874 = vperm.xlu1 %1342, %v43_v26   ;;  %v854_v35 = vmul.f32 %v853_v29, %v773_v34 }
0x11fc   :  { %v857_v30 = vpop.permute.xlu1 %856 }
0x11fd   :  { %v859_v31 = vmul.f32 %v857_v30, %v853_v29 }
0x11ff   :  { %861 = vrot.lane.b32.xlu0 %v859_v31, %s1405_s4 }
0x120d   :  { %v875_v48 = vpop.permute.xlu1 %874 }
0x1271   :  { %v862_v36 = vpop.permute.xlu0 %861 }
0x1272   :  { %v864_v37 = vadd.f32 %v862_v36, %v854_v35 }
0x1274   :  { %1369 = vtanh.f32 %v864_v37 }
0x127e   :  { %v1370_v38 = vpop.eup %1369 }
0x127f   :  { %867 = vrot.lane.b32.xlu0 %v1370_v38, %s1404_s2  ;;  %v1155_v38 = vld [vmem:[#allocation2] ss:$0 sm:$0xff] }
0x1283   :  { %100 = vperm.xlu0 %1341, %v36_v40  }
0x12f1   :  { %v868_v43 = vpop.permute.xlu0 %867 }
0x12f2   :  { %v870_v45 = vmul.f32 %v868_v43, %v853_v29 }
0x12f4   :  { %v871_v46 = vsub.f32 %v870_v45, %v770_v13  ;;  %v882_v21 = vmul.f32 %v875_v48, %v870_v45 }
0x12f6   :  { %v877_v49 = vmul.f32 %v875_v48, %v871_v46 }
0x12f8   :  { %v878_v50 = vadd.f32 %v877_v49, %v770_v13 }
0x12fa   :  { %884 = vrot.lane.b32.xlu1 %v878_v50, %s1405_s4 }
0x1302   :  { %v101_v52 = vpop.permute.xlu0 %100 }
0x1303   :  { %v116_v53 = vmul.f32 %v1504_v24, %v101_v52  ;;  %v1154_v24 = vld [vmem:[%s1724_s5] ss:$0 sm:$0xff]  ;;  %s1139_s5 = sshll.u32 %s1407_s1, 4  ;;  %s1140_s5 = int_to_ptr.vmem [resolvable:$true] %s1139_s5 }
0x1304   :  { %p1380_p1 = scmp.lt.s32.totalorder %s1140_s5, %s1140_s5 }
0x1305   :  { %v130_v54 = vadd.f32 %v1507_v28, %v116_v53  ;;  %v879_v28 = vsub.f32 %v864_v37, %v773_v34 }
0x1307   :  { %v880_v60 = vmul.f32 %v879_v28, %v875_v48 }
0x1309   :  { %v881_v61 = vadd.f32 %v880_v60, %v773_v34 }
0x136c   :  { %v885_v51 = vpop.permute.xlu1 %884 }
0x136d   :  { %1282 = vmatmul.mubr.msk.f32.vlgmr.msra.gmra.mrb[6].mxu1 %vm131_vm4, %v885_v51  ;;  %v1086_v51 = vsub.s32 %v1456_v4, %v1495_v19 }
0x1440   :  { %v954_v55 = vpop.f32.mrb[6].mxu1 }
0x1441   :  { %v958_v5 = vadd.f32 %v954_v55, %v130_v54  ;;  %v1283_v2 = vpop.f32.mrb[7].mxu1 }
0x1443   :  { %1371 = vtanh.f32 %v958_v5 }
0x144d   :  { %v1372_v17 = vpop.eup %1371 }
0x144e   :  { %964 = vrot.lane.b32.xlu1 %v1372_v17, %s1404_s2  ;;  %v960_v56 = vadd.f32 1.0, %v1372_v17 }
0x1450   :  { %v961_v57 = vmul.f32 0.5, %v960_v56 }
0x1452   :  { %981 = vperm.xlu1 %1342, %v44_v18   ;;  %v962_v62 = vmul.f32 %v961_v57, %v881_v61 }
0x14c0   :  { %v965_v58 = vpop.permute.xlu1 %964 }
0x14c1   :  { %v967_v59 = vmul.f32 %v965_v58, %v961_v57 }
0x14c3   :  { %969 = vrot.lane.b32.xlu0 %v967_v59, %s1405_s4 }
0x14c7   :  { %991 = vrot.lane.b32.xlu0 %v1154_v24, %s1406_s21 }
0x14d1   :  { %v982_v23 = vpop.permute.xlu1 %981 }
0x1535   :  { %v970_v63 = vpop.permute.xlu0 %969 }
0x1536   :  { %v972_v0 = vadd.f32 %v970_v63, %v962_v62 }
0x1538   :  { %1373 = vtanh.f32 %v972_v0 }
0x1539   :  { %v992_v1 = vpop.permute.xlu0 %991 }
0x153a   :  { %v994_v8 = vmul.f32 %v992_v1, %v1519_v47  ;;  %v996_v13 = vmul.f32 %v992_v1, %v450_v12  ;;  %v998_v16 = vmul.f32 %v992_v1, %v666_v14  ;;  %v995_v47 = vmul.f32 %v992_v1, %v342_v20 }
0x153b   :  { %v1000_v39 = vmul.f32 %v992_v1, %v882_v21  ;;  %v997_v42 = vmul.f32 %v992_v1, %v558_v41  ;;  %v999_v7 = vmul.f32 %v992_v1, %v774_v44 }
0x153c   :  { %1010 = vrot.lane.b32.xlu0 %v994_v8, %s1405_s4 }
0x1540   :  { %1014 = vrot.lane.b32.xlu0 %v996_v13, %s1405_s4 }
0x1542   :  { %v1374_v15 = vpop.eup %1373 }
0x1543   :  { %975 = vrot.lane.b32.xlu1 %v1374_v15, %s1404_s2  ;;  %s1375_s2 = scalar_lea.vmem %s1140_s5, 128 }
0x1544   :  { %1018 = vrot.lane.b32.xlu0 %v998_v16, %s1405_s4  ;;  %p1376_p0 = scmp.ne.s32.totalorder %s1140_s5, %s1375_s2  ;;  %p1381_p2 = scmp.lt.s32.totalorder %s1375_s2, %s1375_s2 }
0x1546   :  { %p1382_p3 = por %p1381_p2, %p1380_p1 }
0x1547   :  { %1012 = vrot.lane.b32.xlu1 %v995_v47, %s1405_s4 }
0x1548   :  { %1022 = vrot.lane.b32.xlu0 %v1000_v39, %s1405_s4  ;;  %p1383_p4 = pnand %p1382_p3, %p1376_p0 }
0x154b   :  { %1016 = vrot.lane.b32.xlu1 %v997_v42, %s1405_s4 }
0x154f   :  { %1020 = vrot.lane.b32.xlu1 %v999_v7, %s1405_s4 }
0x15ae   :  { %v1011_v9 = vpop.permute.xlu0 %1010 }
0x15af   :  { %v1034_v22 = vsel %vm131_vm4, %v1011_v9, 0.0 }
0x15b0   :  { %1035 = vadd.xlane.f32.xlu0 %v1034_v22 }
0x15b2   :  { %v1015_v25 = vpop.permute.xlu0 %1014 }
0x15b3   :  { %v1040_v6 = vsel %vm131_vm4, %v1015_v25, 0.0 }
0x15b4   :  { %1041 = vadd.xlane.f32.xlu0 %v1040_v6 }
0x15b5   :  { %v976_v10 = vpop.permute.xlu1 %975 }
0x15b6   :  { %v978_v26 = vmul.f32 %v976_v10, %v961_v57  ;;  %v1019_v33 = vpop.permute.xlu0 %1018 }
0x15b7   :  { %v1046_v35 = vsel %vm131_vm4, %v1019_v33, 0.0 }
0x15b8   :  { %v984_v27 = vmul.f32 %v982_v23, %v978_v26 }
0x15b9   :  { %v1013_v29 = vpop.permute.xlu1 %1012 }
0x15ba   :  { %v1001_v30 = vmul.f32 %v992_v1, %v984_v27  ;;  %v1037_v34 = vsel %vm131_vm4, %v1013_v29, 0.0  ;;  %v1023_v36 = vpop.permute.xlu0 %1022 }
0x15bb   :  { %v1052_v37 = vsel %vm131_vm4, %v1023_v36, 0.0 }
0x15bc   :  { %1024 = vrot.lane.b32.xlu1 %v1001_v30, %s1405_s4 }
0x15bd   :  { %v1017_v3 = vpop.permute.xlu1 %1016 }
0x15be   :  { %v1043_v11 = vsel %vm131_vm4, %v1017_v3, 0.0 }
0x15bf   :  { %1044 = vadd.xlane.f32.xlu0 %v1043_v11 }
0x15c1   :  { %v1021_v31 = vpop.permute.xlu1 %1020 }
0x15c2   :  { %v1049_v32 = vsel %vm131_vm4, %v1021_v31, 0.0 }
0x15c3   :  { %1050 = vadd.xlane.f32.xlu0 %v1049_v32 }
0x15e0   :  { %1038 = vadd.xlane.f32.xlu1 %v1037_v34 }
0x15e4   :  { %1047 = vadd.xlane.f32.xlu1 %v1046_v35 }
0x15e8   :  { %1053 = vadd.xlane.f32.xlu1 %v1052_v37 }
0x15f9   :  { %1065 = vperm.xlu1 %1342, %v1155_v38  }
0x162e   :  { %v1025_v40 = vpop.permute.xlu1 %1024 }
0x162f   :  { %v1055_v43 = vsel %vm131_vm4, %v1025_v40, 0.0 }
0x1630   :  { %1056 = vadd.xlane.f32.xlu0 %v1055_v43 }
0x163d   :  { %v1036_v49 = vpop.xlane.xlu0 %1035 }
0x1641   :  { %v1042_v54 = vpop.xlane.xlu0 %1041 }
0x164c   :  { %v1045_v17 = vpop.xlane.xlu0 %1044 }
0x1650   :  { %v1051_v28 = vpop.xlane.xlu0 %1050 }
0x166d   :  { %v1039_v45 = vpop.xlane.xlu1 %1038 }
0x1671   :  { %v1048_v46 = vpop.xlane.xlu1 %1047 }
0x1675   :  { %v1054_v48 = vpop.xlane.xlu1 %1053 }
0x1679   :  { %v1066_v50 = vpop.permute.xlu1 %1065 }
0x167a   :  { %v1068_v52 = vadd.f32 %v1066_v50, %v1036_v49  ;;  %v1069_v53 = vadd.f32 %v1066_v50, %v1039_v45  ;;  %v1070_v55 = vadd.f32 %v1066_v50, %v1042_v54  ;;  %v1071_v56 = vadd.f32 %v1066_v50, %v1045_v17 }
0x167b   :  { %v1072_v58 = vadd.f32 %v1066_v50, %v1048_v46  ;;  %v1073_v60 = vadd.f32 %v1066_v50, %v1051_v28  ;;  %v1074_v19 = vadd.f32 %v1066_v50, %v1054_v48 }
0x167c   :  { %v1087_v5 = vrot.slane %v1068_v52, %v1086_v51  ;;  %v1091_v2 = vrot.slane %v1069_v53, %v1086_v51  ;;  %v1095_v18 = vrot.slane %v1070_v55, %v1086_v51  ;;  %v1099_v24 = vrot.slane %v1071_v56, %v1086_v51 }
0x167d   :  { %v1103_v4 = vrot.slane %v1072_v58, %v1086_v51  ;;  %v1107_v63 = vrot.slane %v1073_v60, %v1086_v51  ;;  %v1111_v12 = vrot.slane %v1074_v19, %v1086_v51 }
0x167e   :  { %v1117_v57 = vsel %vm1116_vm5, %v1091_v2, %v1087_v5 }
0x167f   :  { %v1119_v59 = vsel %vm1118_vm6, %v1095_v18, %v1117_v57 }
0x1680   :  { %v1121_v61 = vsel %vm1120_vm7, %v1099_v24, %v1119_v59 }
0x1681   :  { %v1123_v62 = vsel %vm1122_vm8, %v1103_v4, %v1121_v61 }
0x1682   :  { %v1125_v8 = vsel %vm1124_vm9, %v1107_v63, %v1123_v62 }
0x1683   :  { %v1127_v14 = vsel %vm1126_vm10, %v1111_v12, %v1125_v8 }
0x16bd   :  { %v1057_v0 = vpop.xlane.xlu0 %1056 }
0x16be   :  { %v1075_v1 = vadd.f32 %v1066_v50, %v1057_v0 }
0x16c0   :  { %v1115_v13 = vrot.slane %v1075_v1, %v1086_v51 }
0x16c2   :  { %v1129_v15 = vsel %vm1128_vm11, %v1115_v13, %v1127_v14 }
0x16c3   :  { %1132 = vst.msk [vmem:[#allocation3] sm:$0xff] %vm1131_vm12, %v1129_v15 }
0x16c4   :  { %1386 = shalt.err (!%p1383_p4)
}
0x16c5   :  { %s1387_s23 = scalar_lea.hbm %s1726_s7, 128 }
0x16c6   :  { %p1388_p5 = scmp.ne.s32.totalorder %s1726_s7, %s1387_s23  ;;  %p1391_p6 = scmp.lt.u32.totalorder %s1387_s23, %s1726_s7 }
0x16c8   :  { %p1393_p7 = pnand %p1391_p6, %p1388_p5 }
0x16ca   :  { %1396 = shalt.err (!%p1393_p7)
}
0x16cb   :  { %1142 = dma.vmem_to_hbm [thread:$0]  %s1140_s5, 128, %s1726_s7, [#allocation4]  }
0x16cc   :  { %1397 = dma.done.wait [#allocation4], 128  }
0x16cd   :  { %1398 = vsyncadd [#allocation4], 4294967168 }
0x16ce   :  { %1146 = vsyncpa [#allocation4], 1 }

</bundles_post_ra>
